<compile_context>
chip_gen: v5e
topology: v5e:2x2
jax: 0.10.0
libtpu: 0.0.40
codegen_flags: <defaults>
</compile_context>

<pallas_src>
import jax
import jax.numpy as jnp
from jax.experimental import pallas as pl
from jax.experimental.pallas import tpu as pltpu

# ---- Model constants from the PyTorch module __init__ (Python float64). ----
_OFF = (17.0 + 0.5 * 73 - 0.5 * 7.3,      # 49.85
        3.0 + 0.5 * 13.0 - 0.5 * 1.3,     # 8.85
        0.5 * 22040.0 - 0.5 * 2204.0)     # 9918.0
_SCALE = (7.3, 1.3, 2204.0)
_W1 = ((-0.227, 0.6434, 2.3643),
       (-0.0236, -3.3556, -1.8183))
_B1 = (3.7146, -1.781)
_W2 = ((0.4865, 1.0685),
       (1.7044, -1.388))
_B2 = (-1.8079, 0.683)

# Fold the input normalization into layer 1 (done in float64 at import time):
#   relu(((x - off)/scale) @ W1.T + b1)  ==  relu(x @ W1n.T + b1n)
_W1N = tuple(tuple(_W1[i][j] / _SCALE[j] for j in range(3)) for i in range(2))
_B1N = tuple(_B1[i] - sum(_W1[i][j] * _OFF[j] / _SCALE[j] for j in range(3))
             for i in range(2))

_LANES = 128            # lane width of the packed layout
_MAX_BLOCK_ROWS = 1024  # 1024*128*4B = 512 KiB/plane; ~5 MiB double-buffered


def _cdiv(a: int, b: int) -> int:
    return -(-a // b)


def _fairsquare_kernel(x_ref, o_ref):
    # x_ref: (3, TR, 128) f32 raw-feature planes; o_ref: (2, TR, 128) f32.
    x0 = x_ref[0]
    x1 = x_ref[1]
    x2 = x_ref[2]
    # Hidden layer (3 -> 2) + ReLU; normalization already folded into _W1N/_B1N.
    h0 = jnp.maximum(_W1N[0][0] * x0 + _W1N[0][1] * x1 + _W1N[0][2] * x2 + _B1N[0], 0.0)
    h1 = jnp.maximum(_W1N[1][0] * x0 + _W1N[1][1] * x1 + _W1N[1][2] * x2 + _B1N[1], 0.0)
    # Output layer (2 -> 2) + ReLU.
    o_ref[0] = jnp.maximum(_W2[0][0] * h0 + _W2[0][1] * h1 + _B2[0], 0.0)
    o_ref[1] = jnp.maximum(_W2[1][0] * h0 + _W2[1][1] * h1 + _B2[1], 0.0)


def _choose_tiling(n: int) -> tuple[int, int]:
    """(total rows, rows per block) for a batch of n, rows = sublane axis."""
    rows_needed = max(8, _cdiv(_cdiv(n, _LANES), 8) * 8)
    nb = _cdiv(rows_needed, _MAX_BLOCK_ROWS)
    if rows_needed > 8:
        nb = max(nb, 2)                 # >= 2 grid steps: both v7x TCs get work
    groups = rows_needed // 8
    block_rows = _cdiv(groups, nb) * 8  # even split => padding <= (nb-1)*8 rows
    nb = _cdiv(rows_needed, block_rows)
    return nb * block_rows, block_rows


def fairsquare_nn_v3h2_forward_packed(x_planes: jax.Array,
                                      block_rows: int | None = None) -> jax.Array:
    """Packed entry: (3, rows, 128) f32 feature planes -> (2, rows, 128) f32.

    Batch element n lives at (row, lane) = (n // 128, n % 128).  Using this
    entry point directly avoids the pack/unpack HBM passes of the (N, F)
    convenience wrapper.
    """
    x_planes = x_planes.astype(jnp.float32)
    f, rows, lanes = x_planes.shape
    assert f == 3 and lanes == _LANES and rows % 8 == 0

    if block_rows is None:
        groups = rows // 8
        nb = _cdiv(rows, _MAX_BLOCK_ROWS)
        if rows > 8:
            nb = max(nb, 2)
        nb = min(nb, groups)
        while groups % nb:              # smallest divisor of `groups` >= nb
            nb += 1
        block_rows = (groups // nb) * 8
    assert block_rows % 8 == 0 and rows % block_rows == 0

    return pl.pallas_call(
        _fairsquare_kernel,
        out_shape=jax.ShapeDtypeStruct((2, rows, _LANES), jnp.float32),
        grid=(rows // block_rows,),
        in_specs=[pl.BlockSpec((3, block_rows, _LANES), lambda i: (0, i, 0))],
        out_specs=pl.BlockSpec((2, block_rows, _LANES), lambda i: (0, i, 0)),
        compiler_params=pltpu.CompilerParams(
            dimension_semantics=("parallel",)),
    )(x_planes)


def fairsquare_nn_v3h2_forward(x: jax.Array) -> jax.Array:
    """Pallas forward pass of FairSquareNNV3H2.  x: (N, F>=4) -> (N, 2) f32."""
    x = jnp.atleast_2d(x)
    n = x.shape[0]
    rows, block_rows = _choose_tiling(n)
    n_pad = rows * _LANES

    # Feature gather (columns 0, 1, 3) + lane-dense pack: (3, rows, 128).
    # Layout plumbing only; stays outside the kernel hot loop.
    xT = jnp.stack([x[:, 0], x[:, 1], x[:, 3]], axis=0).astype(jnp.float32)
    xP = jnp.pad(xT, ((0, 0), (0, n_pad - n))).reshape(3, rows, _LANES)

    outP = fairsquare_nn_v3h2_forward_packed(xP, block_rows)

    # Unpack back to (N, 2).
    return outP.reshape(2, n_pad)[:, :n].T


if __name__ == "__main__":
    def _reference(x):
        # Pure-JAX reference with the exact PyTorch semantics (unfused norm).
        off = jnp.array(_OFF, dtype=jnp.float32)
        scale = jnp.array(_SCALE, dtype=jnp.float32)
        w1 = jnp.array(_W1, dtype=jnp.float32)
        b1 = jnp.array(_B1, dtype=jnp.float32)
        w2 = jnp.array(_W2, dtype=jnp.float32)
        b2 = jnp.array(_B2, dtype=jnp.float32)
        x3 = x[:, jnp.array([0, 1, 3])]
        xn = (x3 - off) / scale
        h = jnp.maximum(xn @ w1.T + b1, 0.0)
        return jnp.maximum(h @ w2.T + b2, 0.0)

    def _make_inputs(key, n):
        k0, k1, k2, k3 = jax.random.split(key, 4)
        # Raw features in the ranges implied by the normalization constants:
        # f0 ~ age in [17, 90], f1 ~ education-num in [3, 16],
        # f2 is unused by the model, f3 ~ capital gain in [2204, 22040].
        f0 = 17.0 + 73.0 * jax.random.uniform(k0, (n, 1), dtype=jnp.float32)
        f1 = 3.0 + 13.0 * jax.random.uniform(k1, (n, 1), dtype=jnp.float32)
        f2 = jax.random.uniform(k2, (n, 1), dtype=jnp.float32)
        f3 = 2204.0 + (22040.0 - 2204.0) * jax.random.uniform(k3, (n, 1),
                                                              dtype=jnp.float32)
        return jnp.concatenate([f0, f1, f2, f3], axis=1)

    key = jax.random.PRNGKey(0)
    k_small, k_big = jax.random.split(key)

    # Small batch: single 8x128 tile, grid=(1,).
    x_small = _make_inputs(k_small, 8)          # (8, 4) float32
    y_small = fairsquare_nn_v3h2_forward(x_small)
    jax.block_until_ready(y_small)
    assert y_small.shape == (8, 2)
    assert jnp.allclose(y_small, _reference(x_small), atol=1e-4, rtol=1e-5), \
        "small-batch mismatch vs reference"

    # Larger batch: exercises the 2-step parallel grid and row padding.
    x_big = _make_inputs(k_big, 1500)           # (1500, 4) float32
    y_big = fairsquare_nn_v3h2_forward(x_big)
    jax.block_until_ready(y_big)
    assert y_big.shape == (1500, 2)
    assert jnp.allclose(y_big, _reference(x_big), atol=1e-4, rtol=1e-5), \
        "large-batch mismatch vs reference"

    print("KERNEL_OK")
</pallas_src>

<mosaic_0001>
module attributes {stable_mosaic.version = 11 : i64} {
  func.func @_fairsquare_kernel(%arg0: i32, %arg1: memref<3x8x128xf32, #tpu.memory_space<vmem>>, %arg2: memref<2x8x128xf32, #tpu.memory_space<vmem>>) attributes {dimension_semantics = [#tpu.dimension_semantics<parallel>], iteration_bounds = array<i64: 1>, scalar_prefetch = 0 : i64, scratch_operands = 0 : i64, tpu.core_type = #tpu.core_type<tc>, window_params = [{transform_indices = @transform_0, window_bounds = array<i64: 3, 8, 128>}, {transform_indices = @transform_1, window_bounds = array<i64: 2, 8, 128>}]} {
    %c0 = arith.constant 0 : index
    %c0_0 = arith.constant 0 : index
    %c0_1 = arith.constant 0 : index
    %0 = vector.load %arg1[%c0, %c0_0, %c0_1] : memref<3x8x128xf32, #tpu.memory_space<vmem>>, vector<1x8x128xf32>
    %1 = vector.shape_cast %0 : vector<1x8x128xf32> to vector<8x128xf32>
    %c1 = arith.constant 1 : index
    %c0_2 = arith.constant 0 : index
    %c0_3 = arith.constant 0 : index
    %2 = vector.load %arg1[%c1, %c0_2, %c0_3] : memref<3x8x128xf32, #tpu.memory_space<vmem>>, vector<1x8x128xf32>
    %3 = vector.shape_cast %2 : vector<1x8x128xf32> to vector<8x128xf32>
    %c2 = arith.constant 2 : index
    %c0_4 = arith.constant 0 : index
    %c0_5 = arith.constant 0 : index
    %4 = vector.load %arg1[%c2, %c0_4, %c0_5] : memref<3x8x128xf32, #tpu.memory_space<vmem>>, vector<1x8x128xf32>
    %5 = vector.shape_cast %4 : vector<1x8x128xf32> to vector<8x128xf32>
    %cst = arith.constant -0.0310958903 : f32
    %6 = vector.broadcast %cst : f32 to vector<8x128xf32>
    %7 = arith.mulf %6, %1 : vector<8x128xf32>
    %cst_6 = arith.constant 0.494923085 : f32
    %8 = vector.broadcast %cst_6 : f32 to vector<8x128xf32>
    %9 = arith.mulf %8, %3 : vector<8x128xf32>
    %10 = arith.addf %7, %9 : vector<8x128xf32>
    %cst_7 = arith.constant 0.00107273145 : f32
    %11 = vector.broadcast %cst_7 : f32 to vector<8x128xf32>
    %12 = arith.mulf %11, %5 : vector<8x128xf32>
    %13 = arith.addf %10, %12 : vector<8x128xf32>
    %cst_8 = arith.constant -9.75468921 : f32
    %14 = vector.broadcast %cst_8 : f32 to vector<8x128xf32>
    %15 = arith.addf %13, %14 : vector<8x128xf32>
    %cst_9 = arith.constant 0.000000e+00 : f32
    %16 = vector.broadcast %cst_9 : f32 to vector<8x128xf32>
    %17 = arith.maximumf %15, %16 : vector<8x128xf32>
    %cst_10 = arith.constant -0.00323287677 : f32
    %18 = vector.broadcast %cst_10 : f32 to vector<8x128xf32>
    %19 = arith.mulf %18, %1 : vector<8x128xf32>
    %cst_11 = arith.constant -2.58123088 : f32
    %20 = vector.broadcast %cst_11 : f32 to vector<8x128xf32>
    %21 = arith.mulf %20, %3 : vector<8x128xf32>
    %22 = arith.addf %19, %21 : vector<8x128xf32>
    %cst_12 = arith.constant -8.24999995E-4 : f32
    %23 = vector.broadcast %cst_12 : f32 to vector<8x128xf32>
    %24 = arith.mulf %23, %5 : vector<8x128xf32>
    %25 = arith.addf %22, %24 : vector<8x128xf32>
    %cst_13 = arith.constant 2.940640e+01 : f32
    %26 = vector.broadcast %cst_13 : f32 to vector<8x128xf32>
    %27 = arith.addf %25, %26 : vector<8x128xf32>
    %cst_14 = arith.constant 0.000000e+00 : f32
    %28 = vector.broadcast %cst_14 : f32 to vector<8x128xf32>
    %29 = arith.maximumf %27, %28 : vector<8x128xf32>
    %cst_15 = arith.constant 4.865000e-01 : f32
    %30 = vector.broadcast %cst_15 : f32 to vector<8x128xf32>
    %31 = arith.mulf %30, %17 : vector<8x128xf32>
    %cst_16 = arith.constant 1.068500e+00 : f32
    %32 = vector.broadcast %cst_16 : f32 to vector<8x128xf32>
    %33 = arith.mulf %32, %29 : vector<8x128xf32>
    %34 = arith.addf %31, %33 : vector<8x128xf32>
    %cst_17 = arith.constant -1.807900e+00 : f32
    %35 = vector.broadcast %cst_17 : f32 to vector<8x128xf32>
    %36 = arith.addf %34, %35 : vector<8x128xf32>
    %cst_18 = arith.constant 0.000000e+00 : f32
    %37 = vector.broadcast %cst_18 : f32 to vector<8x128xf32>
    %38 = arith.maximumf %36, %37 : vector<8x128xf32>
    %c0_19 = arith.constant 0 : index
    %c0_20 = arith.constant 0 : index
    %c0_21 = arith.constant 0 : index
    %39 = vector.load %arg2[%c0_19, %c0_20, %c0_21] : memref<2x8x128xf32, #tpu.memory_space<vmem>>, vector<1x8x128xf32>
    %40 = vector.shape_cast %39 : vector<1x8x128xf32> to vector<8x128xf32>
    %41 = vector.shape_cast %38 : vector<8x128xf32> to vector<1x8x128xf32>
    tpu.vector_store %arg2[%c0_19, %c0_20, %c0_21], %41 {strides = array<i32>} : memref<2x8x128xf32, #tpu.memory_space<vmem>>, vector<1x8x128xf32>,
    %cst_22 = arith.constant 1.704400e+00 : f32
    %42 = vector.broadcast %cst_22 : f32 to vector<8x128xf32>
    %43 = arith.mulf %42, %17 : vector<8x128xf32>
    %cst_23 = arith.constant -1.388000e+00 : f32
    %44 = vector.broadcast %cst_23 : f32 to vector<8x128xf32>
    %45 = arith.mulf %44, %29 : vector<8x128xf32>
    %46 = arith.addf %43, %45 : vector<8x128xf32>
    %cst_24 = arith.constant 6.830000e-01 : f32
    %47 = vector.broadcast %cst_24 : f32 to vector<8x128xf32>
    %48 = arith.addf %46, %47 : vector<8x128xf32>
    %cst_25 = arith.constant 0.000000e+00 : f32
    %49 = vector.broadcast %cst_25 : f32 to vector<8x128xf32>
    %50 = arith.maximumf %48, %49 : vector<8x128xf32>
    %c1_26 = arith.constant 1 : index
    %c0_27 = arith.constant 0 : index
    %c0_28 = arith.constant 0 : index
    %51 = vector.load %arg2[%c1_26, %c0_27, %c0_28] : memref<2x8x128xf32, #tpu.memory_space<vmem>>, vector<1x8x128xf32>
    %52 = vector.shape_cast %51 : vector<1x8x128xf32> to vector<8x128xf32>
    %53 = vector.shape_cast %50 : vector<8x128xf32> to vector<1x8x128xf32>
    tpu.vector_store %arg2[%c1_26, %c0_27, %c0_28], %53 {strides = array<i32>} : memref<2x8x128xf32, #tpu.memory_space<vmem>>, vector<1x8x128xf32>,
    return
  }
  func.func @transform_0(%arg0: i32) -> (i32, i32, i32) {
    %c0_i32 = arith.constant 0 : i32
    %c0_i32_0 = arith.constant 0 : i32
    %c0_i32_1 = arith.constant 0 : i32
    return %c0_i32, %arg0, %c0_i32_0 : i32, i32, i32
  }
  func.func @transform_1(%arg0: i32) -> (i32, i32, i32) {
    %c0_i32 = arith.constant 0 : i32
    %c0_i32_0 = arith.constant 0 : i32
    %c0_i32_1 = arith.constant 0 : i32
    return %c0_i32, %arg0, %c0_i32_0 : i32, i32, i32
  }
}

</mosaic_0001>

<bundles_post_ra>
// kernel: tpu_custom_call.1
= control target key start
LH: loop header
LB: loop body
LE: loop exit
PB: predicated region body
PF: predicated region fallthrough
CT: control target
= control target key end

     0   :  { %6 = vsyncpa [#allocation3], 0  ;;  %s158_s0 = inlined_call_operand.hbm [shape: f32[3,8,128], index: 0, kind: input, shape index: {}]   ;;  %s159_s1 = inlined_call_operand.hbm [shape: f32[2,8,128], index: 1, kind: output, shape index: {}]  }
   0x1   :  { %7 = vsyncpa [#allocation4], 0  ;;  %s12_s8 = sshll.u32 %s158_s0, 4  ;;  %s132_s9 = smov [#allocation2]   ;;  %s13_s8 = int_to_ptr.hbm [resolvable:$true] %s12_s8 }
   0x2   :  { %s14_s10 = sshll.u32 %s132_s9, 4  ;;  %s133_s11 = smov 128   ;;  %s15_s10 = int_to_ptr.vmem [resolvable:$true] %s14_s10 }
   0x3   :  { %s134_s12 = smov 8  }
   0x4   :  { %20 = dma.hbm_to_vmem [thread:$0]  %s13_s8, 384, %s15_s10, [#allocation3], %s133_s11, %s133_s11, %s134_s12  }
   0x5   :  { %128 = dma.done.wait [#allocation3], 384  }
   0x6   :  { %129 = vsyncadd [#allocation3], 4294966912  ;;  %v25_v0 = vld [vmem:[#allocation2] sm:$0xff]  ;;  %v27_v1 = vld [vmem:[#allocation2 + $0x8] sm:$0xff]  ;;  %s135_s0 = smov [#allocation5]   ;;  %s63_s16 = sshll.u32 %s159_s1, 4  ;;  %s64_s16 = int_to_ptr.hbm [resolvable:$true] %s63_s16 }
   0x7   :  { %v29_v2 = vld [vmem:[#allocation2 + $0x10] sm:$0xff]  ;;  %v30_v3 = vmul.f32 -0.03109589, %v25_v0  ;;  %v31_v4 = vmul.f32 0.49492308, %v27_v1  ;;  %s61_s13 = sshll.u32 %s135_s0, 4  ;;  %s62_s13 = int_to_ptr.vmem [resolvable:$true] %s61_s13 }
   0x8   :  { %v33_v5 = vmul.f32 0.0010727315, %v29_v2  ;;  %v37_v6 = vmul.f32 -0.0032328768, %v25_v0  ;;  %v38_v7 = vmul.f32 -2.5812309, %v27_v1 }
   0x9   :  { %v40_v8 = vmul.f32 -0.000825, %v29_v2  ;;  %v32_v9 = vadd.f32 %v31_v4, %v30_v3 }
   0xa   :  { %v39_v10 = vadd.f32 %v38_v7, %v37_v6 }
   0xb   :  { %v34_v11 = vadd.f32 %v33_v5, %v32_v9 }
   0xc   :  { %v41_v12 = vadd.f32 %v40_v8, %v39_v10 }
   0xd   :  { %v35_v13 = vadd.f32 -9.754689, %v34_v11 }
   0xe   :  { %v42_v14 = vadd.f32 29.4064, %v41_v12 }
   0xf   :  { %v36_v15 = vmax.f32 %v35_v13, 0.0 }
  0x10   :  { %v43_v16 = vmax.f32 %v42_v14, 0.0 }
  0x11   :  { %v44_v17 = vmul.f32 0.4865, %v36_v15  ;;  %v50_v18 = vmul.f32 1.7044, %v36_v15 }
  0x12   :  { %v45_v19 = vmul.f32 1.0685, %v43_v16  ;;  %v51_v20 = vmul.f32 -1.388, %v43_v16 }
  0x14   :  { %v46_v21 = vadd.f32 %v45_v19, %v44_v17  ;;  %v52_v22 = vadd.f32 %v51_v20, %v50_v18 }
  0x16   :  { %v47_v23 = vadd.f32 -1.8079, %v46_v21  ;;  %v53_v24 = vadd.f32 0.683, %v52_v22 }
  0x18   :  { %v48_v25 = vmax.f32 %v47_v23, 0.0  ;;  %v54_v26 = vmax.f32 %v53_v24, 0.0 }
  0x1a   :  { %49 = vst [vmem:[#allocation5] sm:$0xff] %v48_v25 }
  0x1b   :  { %56 = vst [vmem:[#allocation5 + $0x8] sm:$0xff] %v54_v26 }
  0x1c   :  { %69 = dma.vmem_to_hbm [thread:$0]  %s62_s13, 256, %s64_s16, [#allocation4], %s133_s11, %s133_s11, %s134_s12  }
  0x1d   :  { %130 = dma.done.wait [#allocation4], 256  }
  0x1e   :  { %131 = vsyncadd [#allocation4], 4294967040 }
  0x1f   :  { %74 = vsyncpa [#allocation3], 1 }
  0x20   :  { %75 = vsyncpa [#allocation4], 1 }

</bundles_post_ra>
